<compile_context>
chip_gen: v7x
topology: tpu7x:2x2x1
jax: 0.10.0
libtpu: 0.0.40
codegen_flags: <defaults>
</compile_context>

<pallas_src>
import jax
import jax.numpy as jnp
from jax import lax
from jax.experimental import pallas as pl
from jax.experimental.pallas import tpu as pltpu


def _round_up(x, m):
    return (x + m - 1) // m * m


def _mlp_kernel_lane_dense(x_ref, w1_ref, b1_ref, w2_ref, b2_ref, w3r_ref, b3_ref, o_ref):
    """out_size == 1: fc3 weight passed as a (1, hidden2) row; the whole batch
    tile is written lane-dense as a (1, TB) slab (batch on the lane axis)."""
    # fc1 + ReLU   (dp1 is identity in eval mode)
    h1 = jnp.dot(x_ref[...], w1_ref[...], preferred_element_type=jnp.float32)
    h1 = jnp.maximum(h1 + b1_ref[...], 0.0)
    # fc2 + ReLU   (dp2 is identity in eval mode)
    h2 = jnp.dot(h1, w2_ref[...], preferred_element_type=jnp.float32)
    h2 = jnp.maximum(h2 + b2_ref[...], 0.0)
    # fc3: contract hidden2 against the weight row -> (1, TB); lane-dense store
    # avoids the width-1 masked vst of a (TB, 1) output block.
    y = lax.dot_general(w3r_ref[...], h2, (((1,), (1,)), ((), ())),
                        preferred_element_type=jnp.float32)
    o_ref[...] = (y + b3_ref[...]).astype(o_ref.dtype)


def _mlp_kernel_general(x_ref, w1_ref, b1_ref, w2_ref, b2_ref, w3_ref, b3_ref, o_ref):
    """General out_size: fc3 on the MXU, output block (TB, out_size)."""
    h1 = jnp.dot(x_ref[...], w1_ref[...], preferred_element_type=jnp.float32)
    h1 = jnp.maximum(h1 + b1_ref[...], 0.0)
    h2 = jnp.dot(h1, w2_ref[...], preferred_element_type=jnp.float32)
    h2 = jnp.maximum(h2 + b2_ref[...], 0.0)
    out = jnp.dot(h2, w3_ref[...], preferred_element_type=jnp.float32)
    o_ref[...] = (out + b3_ref[...]).astype(o_ref.dtype)


def regression_nn_forward(x, params, *, block_batch=512):
    """x: [batch, input_size] float32. params: dict w1,b1,w2,b2,w3,b3
    (weights stored [in, out]; transpose of nn.Linear's [out, in] layout)."""
    w1, b1, w2, b2, w3, b3 = (params["w1"], params["b1"], params["w2"],
                              params["b2"], params["w3"], params["b3"])
    batch, input_size = x.shape
    hidden1 = w1.shape[1]
    hidden2 = w2.shape[1]
    out_size = w3.shape[1]

    # Batch tile: large to amortize the ~0.35us/step grid overhead, multiple of
    # 128 for MXU row feeding / lane-dense output, never larger than needed.
    tb = max(128, _round_up(min(block_batch, batch), 128))
    padded = _round_up(batch, tb)
    grid = (padded // tb,)
    if padded != batch:
        x = jnp.pad(x, ((0, padded - batch), (0, 0)))

    const2 = lambda i: (0, 0)   # weights/biases: VMEM-resident, DMA'd once
    x_spec = pl.BlockSpec((tb, input_size), lambda i: (i, 0))
    w_specs = [pl.BlockSpec(w1.shape, const2), pl.BlockSpec(b1.shape, const2),
               pl.BlockSpec(w2.shape, const2), pl.BlockSpec(b2.shape, const2)]

    flops = 2 * padded * (input_size * hidden1 + hidden1 * hidden2 + hidden2 * out_size)
    w_bytes = 4 * (input_size * hidden1 + hidden1 + hidden1 * hidden2 + hidden2
                   + hidden2 * out_size + out_size)
    bytes_accessed = 4 * padded * (input_size + out_size) + w_bytes
    cost = pl.CostEstimate(flops=int(flops), transcendentals=0,
                           bytes_accessed=int(bytes_accessed))

    # VMEM budget: double-buffered x/out tiles + intermediates + resident
    # weights, with headroom; capped below v7x's 64 MiB physical VMEM.
    tile_bytes = 4 * tb * (input_size + hidden1 + hidden2 + out_size)
    vmem_limit = int(min(64 * 1024 * 1024,
                         max(8 * 1024 * 1024, 4 * (tile_bytes + w_bytes))))
    cparams = pltpu.CompilerParams(
        dimension_semantics=("parallel",),   # megacore-shardable batch axis
        vmem_limit_bytes=vmem_limit)

    if out_size == 1:
        in_specs = [x_spec] + w_specs + [pl.BlockSpec((1, hidden2), const2),
                                         pl.BlockSpec((1, 1), const2)]
        out_row = pl.pallas_call(
            _mlp_kernel_lane_dense,
            out_shape=jax.ShapeDtypeStruct((1, padded), x.dtype),
            grid=grid,
            in_specs=in_specs,
            out_specs=pl.BlockSpec((1, tb), lambda i: (0, i)),
            compiler_params=cparams,
            cost_estimate=cost,
        )(x, w1, b1, w2, b2, w3.T, b3.reshape(1, 1))
        # (1, padded) row-major -> (padded, 1) is a free reshape; drop pad rows.
        return out_row.reshape(padded, 1)[:batch]

    in_specs = [x_spec] + w_specs + [pl.BlockSpec(w3.shape, const2),
                                     pl.BlockSpec(b3.shape, const2)]
    out = pl.pallas_call(
        _mlp_kernel_general,
        out_shape=jax.ShapeDtypeStruct((padded, out_size), x.dtype),
        grid=grid,
        in_specs=in_specs,
        out_specs=pl.BlockSpec((tb, out_size), lambda i: (i, 0)),
        compiler_params=cparams,
        cost_estimate=cost,
    )(x, w1, b1, w2, b2, w3, b3)
    return out[:batch]


def init_params(key, input_size, hidden1, hidden2, output_size):
    """Deterministic init mimicking nn.Linear's U(-1/sqrt(fan_in), 1/sqrt(fan_in))."""
    ks = jax.random.split(key, 6)

    def linear(kw, kb, fan_in, fan_out):
        bound = 1.0 / jnp.sqrt(jnp.float32(fan_in))
        w = jax.random.uniform(kw, (fan_in, fan_out), jnp.float32, -bound, bound)
        b = jax.random.uniform(kb, (1, fan_out), jnp.float32, -bound, bound)
        return w, b

    w1, b1 = linear(ks[0], ks[1], input_size, hidden1)
    w2, b2 = linear(ks[2], ks[3], hidden1, hidden2)
    w3, b3 = linear(ks[4], ks[5], hidden2, output_size)
    return dict(w1=w1, b1=b1, w2=w2, b2=b2, w3=w3, b3=b3)


def reference_forward(x, p):
    h1 = jnp.maximum(x @ p["w1"] + p["b1"], 0.0)
    h2 = jnp.maximum(h1 @ p["w2"] + p["b2"], 0.0)
    return h2 @ p["w3"] + p["b3"]


if __name__ == "__main__":
    key = jax.random.PRNGKey(0)
    k_x, k_p = jax.random.split(key)

    # Small shapes consistent with the module's forward:
    batch, input_size, hidden1, hidden2, output_size = 8, 32, 64, 32, 1

    x = jax.random.normal(k_x, (batch, input_size), jnp.float32)
    params = init_params(k_p, input_size, hidden1, hidden2, output_size)

    out = regression_nn_forward(x, params)
    out = jax.block_until_ready(out)

    ref = reference_forward(x, params)
    assert out.shape == (batch, output_size)
    assert jnp.allclose(out, ref, atol=1e-4, rtol=1e-4)

    print("KERNEL_OK")
</pallas_src>

<mosaic_0001>
module attributes {stable_mosaic.version = 11 : i64} {
  func.func @_mlp_kernel_lane_dense(%arg0: i32, %arg1: memref<128x32xf32, #tpu.memory_space<vmem>>, %arg2: memref<32x64xf32, #tpu.memory_space<vmem>>, %arg3: memref<1x64xf32, #tpu.memory_space<vmem>>, %arg4: memref<64x32xf32, #tpu.memory_space<vmem>>, %arg5: memref<1x32xf32, #tpu.memory_space<vmem>>, %arg6: memref<1x32xf32, #tpu.memory_space<vmem>>, %arg7: memref<1x1xf32, #tpu.memory_space<vmem>>, %arg8: memref<1x128xf32, #tpu.memory_space<vmem>>) attributes {dimension_semantics = [#tpu.dimension_semantics<parallel>], iteration_bounds = array<i64: 1>, scalar_prefetch = 0 : i64, scratch_operands = 0 : i64, tpu.core_type = #tpu.core_type<tc>, window_params = [{transform_indices = @transform_0, window_bounds = array<i64: 128, 32>}, {pipeline_mode = #tpu.pipeline_mode<synchronous>, transform_indices = @transform_1, window_bounds = array<i64: 32, 64>}, {pipeline_mode = #tpu.pipeline_mode<synchronous>, transform_indices = @transform_2, window_bounds = array<i64: 1, 64>}, {pipeline_mode = #tpu.pipeline_mode<synchronous>, transform_indices = @transform_3, window_bounds = array<i64: 64, 32>}, {pipeline_mode = #tpu.pipeline_mode<synchronous>, transform_indices = @transform_4, window_bounds = array<i64: 1, 32>}, {pipeline_mode = #tpu.pipeline_mode<synchronous>, transform_indices = @transform_5, window_bounds = array<i64: 1, 32>}, {pipeline_mode = #tpu.pipeline_mode<synchronous>, transform_indices = @transform_6, window_bounds = array<i64: 1, 1>}, {transform_indices = @transform_7, window_bounds = array<i64: 1, 128>}]} {
    %c0 = arith.constant 0 : index
    %c0_0 = arith.constant 0 : index
    %0 = vector.load %arg1[%c0, %c0_0] : memref<128x32xf32, #tpu.memory_space<vmem>>, vector<128x32xf32>
    %c0_1 = arith.constant 0 : index
    %c0_2 = arith.constant 0 : index
    %1 = vector.load %arg2[%c0_1, %c0_2] : memref<32x64xf32, #tpu.memory_space<vmem>>, vector<32x64xf32>
    %cst = arith.constant dense<0.000000e+00> : vector<128x64xf32>
    %2 = tpu.matmul %0, %1, %cst {dimension_numbers = #tpu.dot_dimension_numbers<[1], [0], [0], [1], [0, 0, 1, 1], [], []>} : vector<128x32xf32>, vector<32x64xf32>, vector<128x64xf32> -> vector<128x64xf32>
    %c0_3 = arith.constant 0 : index
    %c0_4 = arith.constant 0 : index
    %3 = vector.load %arg3[%c0_3, %c0_4] : memref<1x64xf32, #tpu.memory_space<vmem>>, vector<1x64xf32>
    %4 = vector.broadcast %3 : vector<1x64xf32> to vector<128x64xf32>
    %5 = arith.addf %2, %4 : vector<128x64xf32>
    %cst_5 = arith.constant 0.000000e+00 : f32
    %6 = vector.broadcast %cst_5 : f32 to vector<128x64xf32>
    %7 = arith.maximumf %5, %6 : vector<128x64xf32>
    %c0_6 = arith.constant 0 : index
    %c0_7 = arith.constant 0 : index
    %8 = vector.load %arg4[%c0_6, %c0_7] : memref<64x32xf32, #tpu.memory_space<vmem>>, vector<64x32xf32>
    %cst_8 = arith.constant dense<0.000000e+00> : vector<128x32xf32>
    %9 = tpu.matmul %7, %8, %cst_8 {dimension_numbers = #tpu.dot_dimension_numbers<[1], [0], [0], [1], [0, 0, 1, 1], [], []>} : vector<128x64xf32>, vector<64x32xf32>, vector<128x32xf32> -> vector<128x32xf32>
    %c0_9 = arith.constant 0 : index
    %c0_10 = arith.constant 0 : index
    %10 = vector.load %arg5[%c0_9, %c0_10] : memref<1x32xf32, #tpu.memory_space<vmem>>, vector<1x32xf32>
    %11 = vector.broadcast %10 : vector<1x32xf32> to vector<128x32xf32>
    %12 = arith.addf %9, %11 : vector<128x32xf32>
    %cst_11 = arith.constant 0.000000e+00 : f32
    %13 = vector.broadcast %cst_11 : f32 to vector<128x32xf32>
    %14 = arith.maximumf %12, %13 : vector<128x32xf32>
    %c0_12 = arith.constant 0 : index
    %c0_13 = arith.constant 0 : index
    %15 = vector.load %arg6[%c0_12, %c0_13] : memref<1x32xf32, #tpu.memory_space<vmem>>, vector<1x32xf32>
    %cst_14 = arith.constant dense<0.000000e+00> : vector<1x128xf32>
    %16 = tpu.matmul %15, %14, %cst_14 {dimension_numbers = #tpu.dot_dimension_numbers<[1], [1], [0], [0], [0, 0, 1, 0], [], []>} : vector<1x32xf32>, vector<128x32xf32>, vector<1x128xf32> -> vector<1x128xf32>
    %c0_15 = arith.constant 0 : index
    %c0_16 = arith.constant 0 : index
    %17 = vector.load %arg7[%c0_15, %c0_16] : memref<1x1xf32, #tpu.memory_space<vmem>>, vector<1x1xf32>
    %18 = vector.broadcast %17 : vector<1x1xf32> to vector<1x128xf32>
    %19 = arith.addf %16, %18 : vector<1x128xf32>
    %c0_17 = arith.constant 0 : index
    %c0_18 = arith.constant 0 : index
    %20 = vector.load %arg8[%c0_17, %c0_18] : memref<1x128xf32, #tpu.memory_space<vmem>>, vector<1x128xf32>
    tpu.vector_store %arg8[%c0_17, %c0_18], %19 {strides = array<i32>} : memref<1x128xf32, #tpu.memory_space<vmem>>, vector<1x128xf32>,
    return
  }
  func.func @transform_0(%arg0: i32) -> (i32, i32) {
    %c0_i32 = arith.constant 0 : i32
    %c0_i32_0 = arith.constant 0 : i32
    return %arg0, %c0_i32 : i32, i32
  }
  func.func @transform_1(%arg0: i32) -> (i32, i32) {
    %c0_i32 = arith.constant 0 : i32
    %c0_i32_0 = arith.constant 0 : i32
    %c0_i32_1 = arith.constant 0 : i32
    return %c0_i32, %c0_i32_0 : i32, i32
  }
  func.func @transform_2(%arg0: i32) -> (i32, i32) {
    %c0_i32 = arith.constant 0 : i32
    %c0_i32_0 = arith.constant 0 : i32
    %c0_i32_1 = arith.constant 0 : i32
    return %c0_i32, %c0_i32_0 : i32, i32
  }
  func.func @transform_3(%arg0: i32) -> (i32, i32) {
    %c0_i32 = arith.constant 0 : i32
    %c0_i32_0 = arith.constant 0 : i32
    %c0_i32_1 = arith.constant 0 : i32
    return %c0_i32, %c0_i32_0 : i32, i32
  }
  func.func @transform_4(%arg0: i32) -> (i32, i32) {
    %c0_i32 = arith.constant 0 : i32
    %c0_i32_0 = arith.constant 0 : i32
    %c0_i32_1 = arith.constant 0 : i32
    return %c0_i32, %c0_i32_0 : i32, i32
  }
  func.func @transform_5(%arg0: i32) -> (i32, i32) {
    %c0_i32 = arith.constant 0 : i32
    %c0_i32_0 = arith.constant 0 : i32
    %c0_i32_1 = arith.constant 0 : i32
    return %c0_i32, %c0_i32_0 : i32, i32
  }
  func.func @transform_6(%arg0: i32) -> (i32, i32) {
    %c0_i32 = arith.constant 0 : i32
    %c0_i32_0 = arith.constant 0 : i32
    %c0_i32_1 = arith.constant 0 : i32
    return %c0_i32, %c0_i32_0 : i32, i32
  }
  func.func @transform_7(%arg0: i32) -> (i32, i32) {
    %c0_i32 = arith.constant 0 : i32
    %c0_i32_0 = arith.constant 0 : i32
    return %c0_i32, %arg0 : i32, i32
  }
}

</mosaic_0001>

<bundles_post_ra>
// kernel: tpu_custom_call.1
= control target key start
LH: loop header
LB: loop body
LE: loop exit
PB: predicated region body
PF: predicated region fallthrough
CT: control target
= control target key end

     0   :  { %s1159_s0 = inlined_call_operand.vmem [shape: f32[128,32], index: 0, kind: input, shape index: {}]   ;;  %s1160_s1 = inlined_call_operand.vmem [shape: f32[32,64], index: 1, kind: input, shape index: {}]   ;;  %s1161_s2 = inlined_call_operand.vmem [shape: f32[1,64], index: 2, kind: input, shape index: {}]   ;;  %s1162_s3 = inlined_call_operand.vmem [shape: f32[64,32], index: 3, kind: input, shape index: {}]   ;;  %s1163_s4 = inlined_call_operand.vmem [shape: f32[1,32], index: 4, kind: input, shape index: {}]   ;;  %s1164_s5 = inlined_call_operand.vmem [shape: f32[1,32], index: 5, kind: input, shape index: {}]   ;;  %s1165_s6 = inlined_call_operand.<no memory space> [shape: f32[1,1], index: 6, kind: input, shape index: {}]   ;;  %s1166_s7 = inlined_call_operand.hbm [shape: f32[1,128], index: 7, kind: output, shape index: {}]  }
   0x1   :  { %v12_v0 = vstv %s1165_s6 }
   0x2   :  { %13 = vst [vmem:[#allocation2] sm:$0x1] %v12_v0 }
   0x3   :  { %v45_v1 = vld [vmem:[%s1160_s1] sm:$0xff]  ;;  %v46_v2 = vld [vmem:[%s1160_s1 + $0x8] sm:$0xff]  ;;  %v47_v3 = vld [vmem:[%s1160_s1 + $0x10] sm:$0xff]  ;;  %vm56_vm0 = vcmask 261120  }
   0x4   :  { %v857_v4 = vpack.c.bf16 %v46_v2, %v45_v1  ;;  %v48_v5 = vld [vmem:[%s1160_s1 + $0x18] sm:$0xff]  ;;  %v29_v6 = vld [vmem:[%s1159_s0] sm:$0xff]  ;;  %v267_v9 = vld [vmem:[%s1162_s3 + $0x8] sm:$0xff] }
   0x5   :  { %v861_v7 = vpack.c.bf16 %v48_v5, %v47_v3  ;;  %758 = vmatprep.mubr.msk.f32.mxu1 %vm56_vm0, %v29_v6  ;;  %v266_v8 = vld [vmem:[%s1162_s3] sm:$0xff]  ;;  %v268_v10 = vld [vmem:[%s1162_s3 + $0x10] sm:$0xff]  ;;  %v269_v11 = vld [vmem:[%s1162_s3 + $0x18] sm:$0xff] }
   0x6   :  { %858 = vmatprep.subr.bf16.mxu1 %v857_v4  ;;  %v30_v12 = vld [vmem:[%s1159_s0 + $0x8] sm:$0xff]  ;;  %v865_v13 = vpack.c.bf16 %v267_v9, %v266_v8  ;;  %v31_v14 = vld [vmem:[%s1159_s0 + $0x10] sm:$0xff]  ;;  %v869_v15 = vpack.c.bf16 %v269_v11, %v268_v10 }
   0x7   :  { %860 = vmatpush3.bf16.msra.mxu1 %v857_v4 }
   0x8   :  { %862 = vmatprep.subr.bf16.mxu1 %v861_v7 }
   0xb   :  { %864 = vmatpush3.bf16.msra.mxu1 %v861_v7 }
   0xc   :  { %14 = vsyncpa [#allocation4], 0  ;;  %866 = vmatprep.subr.bf16.mxu1 %v865_v13  ;;  %v270_v16 = vld [vmem:[%s1162_s3 + $0x20] sm:$0xff]  ;;  %v271_v17 = vld [vmem:[%s1162_s3 + $0x28] sm:$0xff]  ;;  %vm281_vm1 = vcmask 523264   ;;  %vm944_vm2 = vmmov 0  }
   0xd   :  { %v32_v18 = vld [vmem:[%s1159_s0 + $0x18] sm:$0xff]  ;;  %v33_v19 = vld [vmem:[%s1159_s0 + $0x20] sm:$0xff]  ;;  %v873_v20 = vpack.c.bf16 %v271_v17, %v270_v16  ;;  %v272_v21 = vld [vmem:[%s1162_s3 + $0x30] sm:$0xff]  ;;  %s947_s6 = smov [#allocation3]  }
   0xe   :  { %759 = vmatmul.mubr.msk.f32.vlgmr.msra.gmra.mrb[0].mxu1 %vm56_vm0, %v30_v12  ;;  %v273_v22 = vld [vmem:[%s1162_s3 + $0x38] sm:$0xff]  ;;  %v34_v23 = vld [vmem:[%s1159_s0 + $0x28] sm:$0xff]  ;;  %v35_v24 = vld [vmem:[%s1159_s0 + $0x30] sm:$0xff]  ;;  %s630_s11 = sshll.u32 %s947_s6, 4  ;;  %s631_s11 = int_to_ptr.vmem [resolvable:$true] %s630_s11 }
   0xf   :  { %761 = vmatprep.mubr.msk.f32.mxu1 %vm56_vm0, %v31_v14  ;;  %868 = vmatpush3.bf16.msra.mxu1 %v865_v13  ;;  %v877_v25 = vpack.c.bf16 %v273_v22, %v272_v21  ;;  %v36_v26 = vld [vmem:[%s1159_s0 + $0x38] sm:$0xff]  ;;  %v37_v27 = vld [vmem:[%s1159_s0 + $0x40] sm:$0xff]  ;;  %v38_v28 = vld [vmem:[%s1159_s0 + $0x48] sm:$0xff]  ;;  %v945_v21 = vmov 0.0   ;;  %s919_s12 = scalar_lea.vmem %s631_s11, 16  ;;  %s923_s13 = scalar_lea.vmem %s631_s11, 32 }
  0x10   :  { %870 = vmatprep.subr.bf16.mxu1 %v869_v15  ;;  %v39_v29 = vld [vmem:[%s1159_s0 + $0x50] sm:$0xff]  ;;  %v40_v30 = vld [vmem:[%s1159_s0 + $0x58] sm:$0xff]  ;;  %v41_v31 = vld [vmem:[%s1159_s0 + $0x60] sm:$0xff]  ;;  %854 = vmatprep.mubr.msk.f32.mxu0 %vm944_vm2, %v945_v21  ;;  %p920_p0 = scmp.ne.s32.totalorder %s631_s11, %s919_s12  ;;  %p924_p1 = scmp.lt.s32.totalorder %s631_s11, %s631_s11 }
  0x11   :  { %v42_v32 = vld [vmem:[%s1159_s0 + $0x68] sm:$0xff]  ;;  %v43_v33 = vld [vmem:[%s1159_s0 + $0x70] sm:$0xff]  ;;  %v44_v34 = vld [vmem:[%s1159_s0 + $0x78] sm:$0xff]  ;;  %p925_p2 = scmp.lt.s32.totalorder %s923_s13, %s919_s12 }
  0x12   :  { %762 = vmatmul.mubr.msk.f32.gmra.mrb[2].mxu1 %vm56_vm0, %v32_v18  ;;  %v638_v35 = vld [vmem:[%s1161_s2] ss:$0 sm:$0xff]  ;;  %vm1116_vm3 = vmpackc.low %vm56_vm0, %vm56_vm0 }
  0x13   :  { %764 = vmatprep.mubr.msk.f32.mxu1 %vm56_vm0, %v33_v19  ;;  %872 = vmatpush3.bf16.msra.mxu1 %v869_v15  ;;  %v492_v22 = vld [vmem:[#allocation2] sm:$0x1]  ;;  %p926_p3 = por %p925_p2, %p924_p1 }
  0x14   :  { %874 = vmatprep.subr.bf16.mxu1 %v873_v20 }
  0x15   :  { %p927_p4 = pnand %p926_p3, %p920_p0 }
  0x16   :  { %765 = vmatmul.mubr.msk.f32.gmra.mrb[4].mxu1 %vm56_vm0, %v34_v23  ;;  %v946_v23 = vmov 0  }
  0x17   :  { %767 = vmatprep.mubr.msk.f32.mxu1 %vm56_vm0, %v35_v24  ;;  %876 = vmatpush3.bf16.msra.mxu1 %v873_v20  ;;  %v943_v20 = vmov 0.0|0.0   ;;  %v655_v24 = vld [vmem:[%s1163_s4] ss:$0 sm:$0xff] }
  0x18   :  { %878 = vmatprep.subr.bf16.mxu1 %v877_v25  ;;  %881 = vmatprep.subr.bf16.mxu0 %v943_v20 }
  0x19   :  { %918 = vset.pattern.permute.xlu0 %v946_v23 }
  0x1a   :  { %768 = vmatmul.mubr.msk.f32.gmra.mrb[6].mxu1 %vm56_vm0, %v36_v26  ;;  %495 = vperm.xlu0 %918, %v492_v22  }
  0x1b   :  { %770 = vmatprep.mubr.msk.f32.mxu1 %vm56_vm0, %v37_v27  ;;  %880 = vmatpush3.bf16.msra.mxu1 %v877_v25 }
  0x1e   :  { %771 = vmatmul.mubr.msk.f32.gmra.mrb[8].mxu1 %vm56_vm0, %v38_v28 }
  0x1f   :  { %773 = vmatprep.mubr.msk.f32.mxu1 %vm56_vm0, %v39_v29 }
  0x22   :  { %774 = vmatmul.mubr.msk.f32.gmra.mrb[10].mxu1 %vm56_vm0, %v40_v30 }
  0x23   :  { %776 = vmatprep.mubr.msk.f32.mxu1 %vm56_vm0, %v41_v31 }
  0x26   :  { %777 = vmatmul.mubr.msk.f32.gmra.mrb[12].mxu1 %vm56_vm0, %v42_v32 }
  0x27   :  { %779 = vmatprep.mubr.msk.f32.mxu1 %vm56_vm0, %v43_v33 }
  0x2a   :  { %780 = vmatmul.mubr.msk.f32.gmra.mrb[14].mxu1 %vm56_vm0, %v44_v34 }
  0x99   :  { %v496_v23 = vpop.permute.xlu0 %495 }
  0xe1   :  { %v760_v36 = vpop.f32.mrb[0].mxu1 }
  0xe2   :  { %v177_v37 = vadd.f32 %v760_v36, %v638_v35  ;;  %v171_v38 = vpop.f32.mrb[1].mxu1 }
  0xe3   :  { %v172_v39 = vadd.f32 %v638_v35, %v171_v38 }
  0xe4   :  { %v251_v42 = vmax.f32 %v177_v37, 0.0 }
  0xe5   :  { %v250_v40 = vmax.f32 %v172_v39, 0.0  ;;  %v763_v41 = vpop.f32.mrb[2].mxu1 }
  0xe6   :  { %v187_v43 = vadd.f32 %v763_v41, %v638_v35  ;;  %v181_v44 = vpop.f32.mrb[3].mxu1 }
  0xe7   :  { %v182_v45 = vadd.f32 %v638_v35, %v181_v44  ;;  %798 = vmatprep.mubr.msk.f32.mxu1 %vm281_vm1, %v250_v40 }
  0xe8   :  { %v253_v46 = vmax.f32 %v187_v43, 0.0  ;;  %799 = vmatmul.mubr.msk.f32.vlgmr.msra.gmra.mrb[16].mxu1 %vm281_vm1, %v251_v42 }
  0xe9   :  { %v252_v47 = vmax.f32 %v182_v45, 0.0  ;;  %v766_v48 = vpop.f32.mrb[4].mxu1 }
  0xea   :  { %v197_v49 = vadd.f32 %v766_v48, %v638_v35  ;;  %v191_v50 = vpop.f32.mrb[5].mxu1 }
  0xeb   :  { %801 = vmatprep.mubr.msk.f32.mxu1 %vm281_vm1, %v252_v47  ;;  %v192_v51 = vadd.f32 %v638_v35, %v191_v50 }
  0xec   :  { %802 = vmatmul.mubr.msk.f32.gmra.mrb[18].mxu1 %vm281_vm1, %v253_v46  ;;  %v255_v52 = vmax.f32 %v197_v49, 0.0 }
  0xed   :  { %v254_v53 = vmax.f32 %v192_v51, 0.0  ;;  %v769_v54 = vpop.f32.mrb[6].mxu1 }
  0xee   :  { %v207_v55 = vadd.f32 %v769_v54, %v638_v35  ;;  %v201_v56 = vpop.f32.mrb[7].mxu1 }
  0xef   :  { %804 = vmatprep.mubr.msk.f32.mxu1 %vm281_vm1, %v254_v53  ;;  %v202_v57 = vadd.f32 %v638_v35, %v201_v56 }
  0xf0   :  { %805 = vmatmul.mubr.msk.f32.gmra.mrb[20].mxu1 %vm281_vm1, %v255_v52  ;;  %v257_v58 = vmax.f32 %v207_v55, 0.0 }
  0xf1   :  { %v256_v59 = vmax.f32 %v202_v57, 0.0  ;;  %v772_v60 = vpop.f32.mrb[8].mxu1 }
  0xf2   :  { %v217_v61 = vadd.f32 %v772_v60, %v638_v35  ;;  %v211_v62 = vpop.f32.mrb[9].mxu1 }
  0xf3   :  { %807 = vmatprep.mubr.msk.f32.mxu1 %vm281_vm1, %v256_v59  ;;  %v212_v63 = vadd.f32 %v638_v35, %v211_v62 }
  0xf4   :  { %808 = vmatmul.mubr.msk.f32.gmra.mrb[22].mxu1 %vm281_vm1, %v257_v58  ;;  %v259_v0 = vmax.f32 %v217_v61, 0.0 }
  0xf5   :  { %v258_v1 = vmax.f32 %v212_v63, 0.0  ;;  %v775_v2 = vpop.f32.mrb[10].mxu1 }
  0xf6   :  { %v227_v3 = vadd.f32 %v775_v2, %v638_v35  ;;  %v221_v4 = vpop.f32.mrb[11].mxu1 }
  0xf7   :  { %810 = vmatprep.mubr.msk.f32.mxu1 %vm281_vm1, %v258_v1  ;;  %v222_v5 = vadd.f32 %v638_v35, %v221_v4 }
  0xf8   :  { %811 = vmatmul.mubr.msk.f32.gmra.mrb[24].mxu1 %vm281_vm1, %v259_v0  ;;  %v261_v6 = vmax.f32 %v227_v3, 0.0 }
  0xf9   :  { %v260_v7 = vmax.f32 %v222_v5, 0.0  ;;  %v778_v8 = vpop.f32.mrb[12].mxu1 }
  0xfa   :  { %v237_v9 = vadd.f32 %v778_v8, %v638_v35  ;;  %v231_v10 = vpop.f32.mrb[13].mxu1 }
  0xfb   :  { %813 = vmatprep.mubr.msk.f32.mxu1 %vm281_vm1, %v260_v7  ;;  %v232_v11 = vadd.f32 %v638_v35, %v231_v10 }
  0xfc   :  { %814 = vmatmul.mubr.msk.f32.gmra.mrb[26].mxu1 %vm281_vm1, %v261_v6  ;;  %v263_v12 = vmax.f32 %v237_v9, 0.0 }
  0xfd   :  { %v262_v13 = vmax.f32 %v232_v11, 0.0  ;;  %v781_v14 = vpop.f32.mrb[14].mxu1 }
  0xfe   :  { %v247_v15 = vadd.f32 %v781_v14, %v638_v35  ;;  %v241_v16 = vpop.f32.mrb[15].mxu1 }
  0xff   :  { %816 = vmatprep.mubr.msk.f32.mxu1 %vm281_vm1, %v262_v13  ;;  %v242_v17 = vadd.f32 %v638_v35, %v241_v16 }
 0x100   :  { %817 = vmatmul.mubr.msk.f32.gmra.mrb[28].mxu1 %vm281_vm1, %v263_v12  ;;  %v265_v18 = vmax.f32 %v247_v15, 0.0 }
 0x101   :  { %v264_v19 = vmax.f32 %v242_v17, 0.0 }
 0x103   :  { %819 = vmatprep.mubr.msk.f32.mxu1 %vm281_vm1, %v264_v19  ;;  %v498_v19 = vlaneseq }
 0x104   :  { %820 = vmatmul.mubr.msk.f32.gmra.mrb[30].mxu1 %vm281_vm1, %v265_v18  ;;  %v491_v18 = vld [vmem:[%s1164_s5] sm:$0x1] }
 0x105   :  { %v499_v21 = vshrl.u32 %v498_v19, 7 }
 0x107   :  { %v500_v22 = vsub.s32 0, %v499_v21 }
 0x1bb   :  { %v800_v25 = vpop.f32.mrb[16].mxu1 }
 0x1bc   :  { %v402_v26 = vadd.f32 %v800_v25, %v655_v24  ;;  %v396_v27 = vpop.f32.mrb[17].mxu1 }
 0x1bd   :  { %v397_v28 = vadd.f32 %v655_v24, %v396_v27 }
 0x1be   :  { %v476_v29 = vmax.f32 %v402_v26, 0.0 }
 0x1bf   :  { %v475_v30 = vmax.f32 %v397_v28, 0.0  ;;  %v803_v31 = vpop.f32.mrb[18].mxu1 }
 0x1c0   :  { %v412_v32 = vadd.f32 %v803_v31, %v655_v24  ;;  %v406_v33 = vpop.f32.mrb[19].mxu1 }
 0x1c1   :  { %v882_v35 = vpack.c.bf16 %v476_v29, %v475_v30  ;;  %v407_v36 = vadd.f32 %v655_v24, %v406_v33 }
 0x1c2   :  { %v478_v37 = vmax.f32 %v412_v32, 0.0 }
 0x1c3   :  { %v477_v38 = vmax.f32 %v407_v36, 0.0  ;;  %884 = vmatpush3.bf16.xpose.msk.msra.mxu0 %vm1116_vm3, %v882_v35  ;;  %v806_v39 = vpop.f32.mrb[20].mxu1 }
 0x1c4   :  { %v422_v40 = vadd.f32 %v806_v39, %v655_v24  ;;  %v416_v41 = vpop.f32.mrb[21].mxu1  ;;  %885 = vmatprep.subr.bf16.mxu0 %v943_v20 }
 0x1c5   :  { %v886_v42 = vpack.c.bf16 %v478_v37, %v477_v38  ;;  %v417_v43 = vadd.f32 %v655_v24, %v416_v41 }
 0x1c6   :  { %v480_v44 = vmax.f32 %v422_v40, 0.0 }
 0x1c7   :  { %v479_v45 = vmax.f32 %v417_v43, 0.0  ;;  %v809_v46 = vpop.f32.mrb[22].mxu1 }
 0x1c8   :  { %v432_v47 = vadd.f32 %v809_v46, %v655_v24  ;;  %v426_v48 = vpop.f32.mrb[23].mxu1 }
 0x1c9   :  { %v890_v49 = vpack.c.bf16 %v480_v44, %v479_v45  ;;  %v427_v50 = vadd.f32 %v655_v24, %v426_v48 }
 0x1ca   :  { %v482_v51 = vmax.f32 %v432_v47, 0.0 }
 0x1cb   :  { %888 = vmatpush3.bf16.xpose.msk.msra.mxu0 %vm1116_vm3, %v886_v42  ;;  %v481_v52 = vmax.f32 %v427_v50, 0.0  ;;  %v812_v53 = vpop.f32.mrb[24].mxu1 }
 0x1cc   :  { %889 = vmatprep.subr.bf16.mxu0 %v943_v20  ;;  %v442_v54 = vadd.f32 %v812_v53, %v655_v24  ;;  %v436_v55 = vpop.f32.mrb[25].mxu1 }
 0x1cd   :  { %v894_v56 = vpack.c.bf16 %v482_v51, %v481_v52  ;;  %v437_v57 = vadd.f32 %v655_v24, %v436_v55 }
 0x1ce   :  { %v484_v58 = vmax.f32 %v442_v54, 0.0 }
 0x1cf   :  { %v483_v59 = vmax.f32 %v437_v57, 0.0  ;;  %v815_v60 = vpop.f32.mrb[26].mxu1 }
 0x1d0   :  { %v452_v61 = vadd.f32 %v815_v60, %v655_v24  ;;  %v446_v62 = vpop.f32.mrb[27].mxu1 }
 0x1d1   :  { %v898_v63 = vpack.c.bf16 %v484_v58, %v483_v59  ;;  %v447_v0 = vadd.f32 %v655_v24, %v446_v62 }
 0x1d2   :  { %v486_v1 = vmax.f32 %v452_v61, 0.0 }
 0x1d3   :  { %892 = vmatpush3.bf16.xpose.msk.msra.mxu0 %vm1116_vm3, %v890_v49  ;;  %v485_v2 = vmax.f32 %v447_v0, 0.0  ;;  %v818_v3 = vpop.f32.mrb[28].mxu1 }
 0x1d4   :  { %893 = vmatprep.subr.bf16.mxu0 %v943_v20  ;;  %v462_v4 = vadd.f32 %v818_v3, %v655_v24  ;;  %v456_v5 = vpop.f32.mrb[29].mxu1 }
 0x1d5   :  { %v902_v6 = vpack.c.bf16 %v486_v1, %v485_v2  ;;  %v457_v7 = vadd.f32 %v655_v24, %v456_v5 }
 0x1d6   :  { %v488_v8 = vmax.f32 %v462_v4, 0.0 }
 0x1d7   :  { %v487_v9 = vmax.f32 %v457_v7, 0.0  ;;  %v821_v10 = vpop.f32.mrb[30].mxu1 }
 0x1d8   :  { %v472_v11 = vadd.f32 %v821_v10, %v655_v24  ;;  %v466_v12 = vpop.f32.mrb[31].mxu1 }
 0x1d9   :  { %v906_v13 = vpack.c.bf16 %v488_v8, %v487_v9  ;;  %v467_v14 = vadd.f32 %v655_v24, %v466_v12  ;;  %v501_v24 = vrot.slane %v496_v23, %v500_v22 }
 0x1da   :  { %v490_v15 = vmax.f32 %v472_v11, 0.0 }
 0x1db   :  { %896 = vmatpush3.bf16.xpose.msk.msra.mxu0 %vm1116_vm3, %v894_v56  ;;  %v489_v16 = vmax.f32 %v467_v14, 0.0 }
 0x1dc   :  { %897 = vmatprep.subr.bf16.mxu0 %v943_v20 }
 0x1dd   :  { %v910_v17 = vpack.c.bf16 %v490_v15, %v489_v16 }
 0x1e3   :  { %900 = vmatpush3.bf16.xpose.msk.msra.mxu0 %vm1116_vm3, %v898_v63 }
 0x1e4   :  { %901 = vmatprep.subr.bf16.mxu0 %v943_v20 }
 0x1eb   :  { %904 = vmatpush3.bf16.xpose.msk.msra.mxu0 %vm1116_vm3, %v902_v6 }
 0x1ec   :  { %905 = vmatprep.subr.bf16.mxu0 %v943_v20 }
 0x1f3   :  { %908 = vmatpush3.bf16.xpose.msk.msra.mxu0 %vm1116_vm3, %v906_v13 }
 0x1f4   :  { %909 = vmatprep.subr.bf16.mxu0 %v943_v20 }
 0x1fb   :  { %912 = vmatpush3.bf16.xpose.msk.msra.mxu0 %vm1116_vm3, %v910_v17 }
 0x202   :  { %855 = vmatmul.mubr.msk.f32.vlgmr.msra.gmra.mrb[0].mxu0 %vm56_vm0, %v491_v18 }
 0x2d5   :  { %v619_v25 = vpop.f32.mrb[0].mxu0 }
 0x2d6   :  { %v620_v26 = vadd.f32 %v619_v25, %v501_v24  ;;  %v856_v27 = vpop.f32.mrb[1].mxu0 }
 0x2d8   :  { %623 = vst [vmem:[#allocation3] sm:$0x1] %v620_v26 }
 0x2d9   :  { %930 = shalt.err (!%p927_p4)
}
 0x2da   :  { %s931_s3 = scalar_lea.hbm %s1166_s7, 16 }
 0x2db   :  { %p932_p5 = scmp.ne.s32.totalorder %s1166_s7, %s931_s3  ;;  %p935_p6 = scmp.lt.u32.totalorder %s931_s3, %s1166_s7 }
 0x2dd   :  { %p937_p7 = pnand %p935_p6, %p932_p5 }
 0x2df   :  { %940 = shalt.err (!%p937_p7)
}
 0x2e0   :  { %633 = dma.vmem_to_hbm [thread:$0]  %s631_s11, 16, %s1166_s7, [#allocation4]  }
 0x2e1   :  { %941 = dma.done.wait [#allocation4], 16  }
 0x2e2   :  { %942 = vsyncadd [#allocation4], 4294967280 }
 0x2e3   :  { %637 = vsyncpa [#allocation4], 1 }

</bundles_post_ra>
